<compile_context>
chip_gen: v5e
topology: v5e:2x2
jax: 0.10.0
libtpu: 0.0.40
codegen_flags: <defaults>
</compile_context>

<pallas_src>
import jax
import jax.numpy as jnp
from jax.experimental import pallas as pl
from jax.experimental.pallas import tpu as pltpu


def _lpl_update_kernel(coef_ref, xt_ref, yp_ref, yt_ref, w_ref, out_ref):
    # SMEM scalars: c_true = lr*(alpha - beta), c_pred = lr*beta.
    c_true = coef_ref[0]
    c_pred = coef_ref[1]

    # Fold the hyperparameters into the small (B, tn) operand on the VPU, in f32
    # (v5e has no bf16 VPU path).
    rhs = (c_true * yt_ref[...].astype(jnp.float32)
           + c_pred * yp_ref[...].astype(jnp.float32))          # (B, tn)

    # Single MXU contraction in canonical (M,K)@(K,N) form; cast rhs back to the
    # x operand dtype so bf16 inputs use the full-rate bf16 MXU path.
    delta = jnp.dot(xt_ref[...], rhs.astype(xt_ref.dtype),
                    preferred_element_type=jnp.float32)          # (tm, tn)

    out_ref[...] = (w_ref[...].astype(jnp.float32) + delta).astype(out_ref.dtype)


def _pick_tile(dim, target):
    """Full-extent block (always layout-legal) unless `target` evenly tiles `dim`."""
    if dim <= target or dim % target != 0:
        return dim
    return target


def lpl_learning_forward(x, y_pred, y_true, weights,
                         lr=0.001, alpha=0.1, beta=0.01,
                         tm=512, tn=1024):
    """Returns the updated weights (input_dim, output_dim).

    NOTE: the `weights` buffer is aliased to the output (donated under jit).
    """
    B, D_in = x.shape
    B2, D_out = y_pred.shape
    assert B == B2 and y_true.shape == (B, D_out)
    if weights.shape != (D_in, D_out):
        raise ValueError(
            f"Shape mismatch: weights {weights.shape} vs delta_w {(D_in, D_out)}")

    tm = _pick_tile(D_in, tm)    # multiple of 8   (512) or full extent
    tn = _pick_tile(D_out, tn)   # multiple of 128 (1024) or full extent
    grid = (D_in // tm, D_out // tn)

    # Pre-transpose x outside the kernel (cheap XLA op): the MXU gets the
    # canonical (M, K) operand and D_in is the leading blocked axis.
    x_t = jnp.swapaxes(x, 0, 1)                                  # (D_in, B)

    # Runtime hyperparameters as SMEM scalars (no recompile when they change).
    coefs = jnp.asarray([lr * (alpha - beta), lr * beta], dtype=jnp.float32)

    in_specs = [
        pl.BlockSpec(memory_space=pltpu.MemorySpace.SMEM),        # coefs (2,)
        pl.BlockSpec((tm, B), lambda i, j: (i, 0)),               # x_t tile
        pl.BlockSpec((B, tn), lambda i, j: (0, j)),               # y_pred tile
        pl.BlockSpec((B, tn), lambda i, j: (0, j)),               # y_true tile
        pl.BlockSpec((tm, tn), lambda i, j: (i, j)),              # weights tile
    ]
    out_spec = pl.BlockSpec((tm, tn), lambda i, j: (i, j))

    # VMEM budget from the tile footprint (f32 worst case, double-buffered),
    # clamped so v7x's 64 MiB physical VMEM stays safe.
    tile_bytes = 4 * (tm * B + 2 * B * tn + 2 * tm * tn)
    vmem_limit = int(min(max(8 * tile_bytes, 32 << 20), 64 << 20))

    flops = 2 * B * D_in * D_out
    bytes_accessed = (2 * D_in * D_out * jnp.dtype(weights.dtype).itemsize
                      + B * D_in * jnp.dtype(x.dtype).itemsize
                      + 2 * B * D_out * jnp.dtype(y_pred.dtype).itemsize)

    return pl.pallas_call(
        _lpl_update_kernel,
        out_shape=jax.ShapeDtypeStruct((D_in, D_out), weights.dtype),
        grid=grid,
        in_specs=in_specs,
        out_specs=out_spec,
        # Reuse the weights HBM buffer for the output (weights is input #4).
        input_output_aliases={4: 0},
        compiler_params=pltpu.CompilerParams(
            dimension_semantics=("parallel", "parallel"),
            vmem_limit_bytes=vmem_limit,
        ),
        cost_estimate=pl.CostEstimate(
            flops=flops, transcendentals=0, bytes_accessed=bytes_accessed),
    )(coefs, x_t, y_pred, y_true, weights)


if __name__ == "__main__":
    # Small shapes consistent with the module's forward.
    batch, input_dim, output_dim = 8, 16, 32
    lr, alpha, beta = 0.001, 0.1, 0.01

    key = jax.random.PRNGKey(0)
    kw, kx, kp, kt = jax.random.split(key, 4)

    # Deterministic parameter init: randn(input_dim, output_dim) * 0.01
    weights = jax.random.normal(kw, (input_dim, output_dim), jnp.float32) * 0.01
    x = jax.random.normal(kx, (batch, input_dim), jnp.float32)
    y_pred = jax.random.normal(kp, (batch, output_dim), jnp.float32)
    y_true = jax.random.normal(kt, (batch, output_dim), jnp.float32)

    # Pure-JAX reference (literal PyTorch op order), computed BEFORE the kernel
    # call since the kernel aliases/donates the weights buffer.
    ref = weights + lr * (alpha * (x.T @ y_true) + beta * (x.T @ (y_pred - y_true)))

    new_w = lpl_learning_forward(x, y_pred, y_true, weights,
                                 lr=lr, alpha=alpha, beta=beta)
    new_w = jax.block_until_ready(new_w)

    assert new_w.shape == (input_dim, output_dim)
    assert jnp.allclose(new_w, ref, atol=1e-5, rtol=1e-5), "mismatch vs reference"

    print("KERNEL_OK")
</pallas_src>

<mosaic_0001>
module attributes {stable_mosaic.version = 11 : i64} {
  func.func @_lpl_update_kernel(%arg0: i32, %arg1: i32, %arg2: memref<2xf32, #tpu.memory_space<smem>>, %arg3: memref<16x8xf32, #tpu.memory_space<vmem>>, %arg4: memref<8x32xf32, #tpu.memory_space<vmem>>, %arg5: memref<8x32xf32, #tpu.memory_space<vmem>>, %arg6: memref<16x32xf32, #tpu.memory_space<vmem>>, %arg7: memref<16x32xf32, #tpu.memory_space<vmem>>) attributes {dimension_semantics = [#tpu.dimension_semantics<parallel>, #tpu.dimension_semantics<parallel>], iteration_bounds = array<i64: 1, 1>, scalar_prefetch = 0 : i64, scratch_operands = 0 : i64, tpu.core_type = #tpu.core_type<tc>, window_params = [{transform_indices = @transform_0, window_bounds = array<i64: 2>}, {transform_indices = @transform_1, window_bounds = array<i64: 16, 8>}, {transform_indices = @transform_2, window_bounds = array<i64: 8, 32>}, {transform_indices = @transform_3, window_bounds = array<i64: 8, 32>}, {transform_indices = @transform_4, window_bounds = array<i64: 16, 32>}, {transform_indices = @transform_5, window_bounds = array<i64: 16, 32>}]} {
    %c0 = arith.constant 0 : index
    %0 = memref.load %arg2[%c0] : memref<2xf32, #tpu.memory_space<smem>>
    %c1 = arith.constant 1 : index
    %1 = memref.load %arg2[%c1] : memref<2xf32, #tpu.memory_space<smem>>
    %c0_0 = arith.constant 0 : index
    %c0_1 = arith.constant 0 : index
    %2 = vector.load %arg5[%c0_0, %c0_1] : memref<8x32xf32, #tpu.memory_space<vmem>>, vector<8x32xf32>
    %3 = vector.broadcast %0 : f32 to vector<8x32xf32>
    %4 = arith.mulf %3, %2 : vector<8x32xf32>
    %c0_2 = arith.constant 0 : index
    %c0_3 = arith.constant 0 : index
    %5 = vector.load %arg4[%c0_2, %c0_3] : memref<8x32xf32, #tpu.memory_space<vmem>>, vector<8x32xf32>
    %6 = vector.broadcast %1 : f32 to vector<8x32xf32>
    %7 = arith.mulf %6, %5 : vector<8x32xf32>
    %8 = arith.addf %4, %7 : vector<8x32xf32>
    %c0_4 = arith.constant 0 : index
    %c0_5 = arith.constant 0 : index
    %9 = vector.load %arg3[%c0_4, %c0_5] : memref<16x8xf32, #tpu.memory_space<vmem>>, vector<16x8xf32>
    %cst = arith.constant dense<0.000000e+00> : vector<16x32xf32>
    %10 = tpu.matmul %9, %8, %cst {dimension_numbers = #tpu.dot_dimension_numbers<[1], [0], [0], [1], [0, 0, 1, 1], [], []>} : vector<16x8xf32>, vector<8x32xf32>, vector<16x32xf32> -> vector<16x32xf32>
    %c0_6 = arith.constant 0 : index
    %c0_7 = arith.constant 0 : index
    %11 = vector.load %arg6[%c0_6, %c0_7] : memref<16x32xf32, #tpu.memory_space<vmem>>, vector<16x32xf32>
    %12 = arith.addf %11, %10 : vector<16x32xf32>
    %c0_8 = arith.constant 0 : index
    %c0_9 = arith.constant 0 : index
    %13 = vector.load %arg7[%c0_8, %c0_9] : memref<16x32xf32, #tpu.memory_space<vmem>>, vector<16x32xf32>
    tpu.vector_store %arg7[%c0_8, %c0_9], %12 {strides = array<i32>} : memref<16x32xf32, #tpu.memory_space<vmem>>, vector<16x32xf32>,
    return
  }
  func.func @transform_0(%arg0: i32, %arg1: i32) -> i32 {
    %c0_i32 = arith.constant 0 : i32
    %c0_i32_0 = arith.constant 0 : i32
    return %c0_i32 : i32
  }
  func.func @transform_1(%arg0: i32, %arg1: i32) -> (i32, i32) {
    %c0_i32 = arith.constant 0 : i32
    %c0_i32_0 = arith.constant 0 : i32
    return %arg0, %c0_i32 : i32, i32
  }
  func.func @transform_2(%arg0: i32, %arg1: i32) -> (i32, i32) {
    %c0_i32 = arith.constant 0 : i32
    %c0_i32_0 = arith.constant 0 : i32
    return %c0_i32, %arg1 : i32, i32
  }
  func.func @transform_3(%arg0: i32, %arg1: i32) -> (i32, i32) {
    %c0_i32 = arith.constant 0 : i32
    %c0_i32_0 = arith.constant 0 : i32
    return %c0_i32, %arg1 : i32, i32
  }
  func.func @transform_4(%arg0: i32, %arg1: i32) -> (i32, i32) {
    %c0_i32 = arith.constant 0 : i32
    return %arg0, %arg1 : i32, i32
  }
  func.func @transform_5(%arg0: i32, %arg1: i32) -> (i32, i32) {
    %c0_i32 = arith.constant 0 : i32
    return %arg0, %arg1 : i32, i32
  }
}

</mosaic_0001>

<bundles_post_ra>
// kernel: tpu_custom_call.1
= control target key start
LH: loop header
LB: loop body
LE: loop exit
PB: predicated region body
PF: predicated region fallthrough
CT: control target
= control target key end

     0   :  { %10 = vsyncpa [#allocation5], 0  ;;  %s255_s0 = inlined_call_operand.vmem [shape: f32[2], index: 0, kind: input, shape index: {}]   ;;  %s256_s1 = inlined_call_operand.vmem [shape: f32[16,8], index: 1, kind: input, shape index: {}]   ;;  %s257_s2 = inlined_call_operand.vmem [shape: f32[8,32], index: 2, kind: input, shape index: {}]   ;;  %s258_s3 = inlined_call_operand.vmem [shape: f32[8,32], index: 3, kind: input, shape index: {}]   ;;  %s259_s4 = inlined_call_operand.hbm [shape: f32[16,32], index: 4, kind: input, shape index: {}, may-alias: {4,5}]   ;;  %s260_s5 = inlined_call_operand.hbm [shape: f32[16,32], index: 5, kind: output, shape index: {}, may-alias: {4,5}]  }
   0x1   :  { %11 = vsyncpa [#allocation3], 0 }
   0x2   :  { %12 = vsyncpa [#allocation4], 0  ;;  %s18_s20 = sshll.u32 %s255_s0, 4  ;;  %s32_s23 = sshll.u32 %s259_s4, 4  ;;  %s19_s20 = int_to_ptr.vmem [resolvable:$true] %s18_s20  ;;  %s33_s23 = int_to_ptr.hbm [resolvable:$true] %s32_s23 }
   0x3   :  { %s193_s24 = smov [#allocation2]   ;;  %s194_s25 = smov [#allocation6]  }
   0x4   :  { %21 = dma.vmem_to_smem %s19_s20, 16, %s193_s24, [#allocation5]  }
   0x5   :  { %s34_s26 = sshll.u32 %s194_s25, 4  ;;  %s195_s27 = smov 128   ;;  %s35_s26 = int_to_ptr.vmem [resolvable:$true] %s34_s26 }
   0x6   :  { %s196_s28 = smov 8  }
   0x7   :  { %40 = dma.hbm_to_vmem [thread:$0]  %s33_s23, 256, %s35_s26, [#allocation3], %s195_s27, %s195_s27, %s196_s28  }
   0x8   :  { %187 = dma.done.wait [#allocation5], 16  }
   0x9   :  { %188 = vsyncadd [#allocation5], 4294967280 }
   0xa   :  { %189 = dma.done.wait [#allocation3], 256  }
   0xb   :  { %190 = vsyncadd [#allocation3], 4294967040 }
   0xc   :  { %49 = sfence }
   0xd   :  { %s50_s0 = sld [smem:[#allocation2]]  ;;  %v52_v0 = vld [vmem:[%s258_s3] sm:$0xff]  ;;  %vm61_vm0 = vcmask 64512   ;;  %v60_v8 = vld [vmem:[%s256_s1 + $0x8] sm:$0xff]  ;;  %s104_s14 = sshll.u32 %s260_s5, 4  ;;  %vm95_vm1 = vcmask 261120   ;;  %s105_s14 = int_to_ptr.hbm [resolvable:$true] %s104_s14 }
   0xe   :  { %s118_s29 = sld [smem:[#allocation2 + $0x1]]  ;;  %v55_v1 = vld [vmem:[%s257_s2] sm:$0xff]  ;;  %v92_v10 = vld [vmem:[#allocation6 + $0x8] sm:$0xff]  ;;  %s197_s2 = smov [#allocation7]  }
   0xf   :  { %v59_v7 = vld [vmem:[%s256_s1] sm:$0xff]  ;;  %s102_s3 = sshll.u32 %s197_s2, 4  ;;  %s103_s3 = int_to_ptr.vmem [resolvable:$true] %s102_s3 }
  0x10   :  { %v91_v9 = vld [vmem:[#allocation6] sm:$0xff] }
  0x13   :  { %v53_v2 = vstv %s50_s0 }
  0x14   :  { %v54_v3 = vmul.f32 %v53_v2, %v52_v0  ;;  %v56_v4 = vstv %s118_s29 }
  0x15   :  { %v57_v5 = vmul.f32 %v56_v4, %v55_v1 }
  0x17   :  { %v58_v6 = vadd.f32 %v57_v5, %v54_v3 }
  0x19   :  { %83 = vmatpush.msra.mxu0 %v58_v6  ;;  %121 = vmatpush.msra.mxu1 %v58_v6 }
  0x1a   :  { %119 = vmatmul.msk.f32.vlgmr.msra.gmra.mxu0 %vm61_vm0, %v59_v7  ;;  %120 = vmatmul.msk.f32.vlgmr.msra.gmra.mxu1 %vm61_vm0, %v60_v8 }
  0x97   :  { %v85_v11 = vpop.f32.mrf.mxu0  ;;  %v88_v12 = vpop.f32.mrf.mxu1 }
  0x98   :  { %v93_v13 = vadd.f32 %v91_v9, %v85_v11  ;;  %v94_v14 = vadd.f32 %v92_v10, %v88_v12 }
  0x9a   :  { %96 = vst.msk [vmem:[#allocation7] sm:$0xff] %vm95_vm1, %v93_v13 }
  0x9b   :  { %97 = vst.msk [vmem:[#allocation7 + $0x8] sm:$0xff] %vm95_vm1, %v94_v14 }
  0x9c   :  { %110 = dma.vmem_to_hbm [thread:$0]  %s103_s3, 256, %s105_s14, [#allocation4], %s195_s27, %s195_s27, %s196_s28  }
  0x9d   :  { %191 = dma.done.wait [#allocation4], 256  }
  0x9e   :  { %192 = vsyncadd [#allocation4], 4294967040 }
  0x9f   :  { %115 = vsyncpa [#allocation3], 1 }
  0xa0   :  { %116 = vsyncpa [#allocation4], 1 }
  0xa1   :  { %117 = vsyncpa [#allocation5], 1 }

</bundles_post_ra>
